<compile_context>
chip_gen: v7x
topology: tpu7x:2x2x1
jax: 0.10.0
libtpu: 0.0.40
codegen_flags: <defaults>
</compile_context>

<pallas_src>
import jax
import jax.numpy as jnp
from jax.experimental import pallas as pl
from jax.experimental.pallas import tpu as pltpu


WINDOW = 10      # max-pool window
N_OFFSETS = 5    # sliding offsets 0..4
N_CHUNKS = 120   # chunks per offset
N_STARTS = (N_CHUNKS - 1) * WINDOW + N_OFFSETS          # 1195 valid window starts
MIN_QS = N_STARTS + WINDOW - 1                          # 1204


# ----------------------------------------------------------------------------
# fused kernel
# ----------------------------------------------------------------------------
def _struct3_kernel(step_ref, x_ref, wa_ref, ba_ref, wb_ref, bb_ref,
                    wc_ref, bc_ref, out_ref, y_ref):
    num_feat, B, QS = x_ref.shape
    n_starts = wa_ref.shape[0]                          # 1195

    # 1) fc_step: y[b, t] = sum_f x[f, b, t] * w[f] + bias   (7 VPU FMAs)
    y = jnp.full((B, QS), step_ref[num_feat], jnp.float32)
    for f in range(num_feat):                           # static unroll (7 taps)
        y = y + x_ref[f] * step_ref[f]
    y_ref[...] = y

    # 2) sliding max over window=10: m[b, s] = max_{j<10} y[b, s + j]
    m = y_ref[:, 0:n_starts]
    for j in range(1, WINDOW):                          # static unroll
        m = jnp.maximum(m, y_ref[:, j:j + n_starts])

    # 3) fcA: the (chunk, offset)->600 interleave is pre-folded into wa_ref
    h = jnp.dot(m, wa_ref[...], preferred_element_type=jnp.float32) + ba_ref[...]
    h = jnp.maximum(h, 0.0)                             # ReLU
    # 4) fcB + ReLU
    h = jnp.dot(h, wb_ref[...], preferred_element_type=jnp.float32) + bb_ref[...]
    h = jnp.maximum(h, 0.0)
    # 5) fcC
    out_ref[...] = (jnp.dot(h, wc_ref[...], preferred_element_type=jnp.float32)
                    + bc_ref[...])


def struct3_forward(x, kp):
    B, QS, _ = x.shape
    assert QS >= MIN_QS, QS
    x_t = jnp.transpose(x, (2, 0, 1))                   # (F, B, QS): lane-major time
    num_classes = kp['wc'].shape[1]
    smem = pl.BlockSpec(memory_space=pltpu.MemorySpace.SMEM)
    vmem = pl.BlockSpec(memory_space=pltpu.MemorySpace.VMEM)
    return pl.pallas_call(
        _struct3_kernel,
        out_shape=jax.ShapeDtypeStruct((B, num_classes), jnp.float32),
        in_specs=[smem] + [vmem] * 7,
        out_specs=vmem,
        scratch_shapes=[pltpu.VMEM((B, QS), jnp.float32)],
    )(kp['step_wb'], x_t, kp['wa_perm'], kp['ba'], kp['wb'], kp['bb'],
      kp['wc'], kp['bc'])


forward = jax.jit(struct3_forward)


# ----------------------------------------------------------------------------
# parameters (synthetic, deterministic) — both torch-layout and kernel-layout
# ----------------------------------------------------------------------------
def init_params(key, num_feat=7, d_a=128, d_b=32, num_classes=2):
    d_pool = N_CHUNKS * N_OFFSETS                       # 600
    keys = jax.random.split(key, 8)

    def nrm(k, shape, fan_in):
        return jax.random.normal(k, shape, jnp.float32) / jnp.sqrt(fan_in)

    w_step = nrm(keys[0], (num_feat,), num_feat)
    b_step = nrm(keys[1], (), num_feat)
    WA = nrm(keys[2], (d_a, d_pool), d_pool)
    bA = nrm(keys[3], (d_a,), d_pool)
    WB = nrm(keys[4], (d_b, d_a), d_a)
    bB = nrm(keys[5], (d_b,), d_a)
    WC = nrm(keys[6], (num_classes, d_b), d_b)
    bC = nrm(keys[7], (num_classes,), d_b)

    # ---- kernel-side parameters (precomputed once, outside the forward) ----
    step_wb = jnp.concatenate([w_step, b_step[None]]).astype(jnp.float32)  # SMEM pack
    # flat index k = chunk*5 + offset reads the window starting at
    # s = chunk*10 + offset -> scatter row k of WA^T to row s (others stay 0).
    k = jnp.arange(d_pool)
    starts = (k // N_OFFSETS) * WINDOW + (k % N_OFFSETS)
    wa_perm = jnp.zeros((N_STARTS, d_a), jnp.float32).at[starts].set(WA.T)

    kernel_p = dict(step_wb=step_wb, wa_perm=wa_perm, ba=bA[None, :],
                    wb=WB.T, bb=bB[None, :], wc=WC.T, bc=bC[None, :])
    torch_p = dict(w_step=w_step, b_step=b_step, WA=WA, bA=bA, WB=WB, bB=bB,
                   WC=WC, bC=bC)
    return kernel_p, torch_p


# ----------------------------------------------------------------------------
# pure-JAX reference mirroring the PyTorch forward (for a sanity check)
# ----------------------------------------------------------------------------
def reference_forward(x, tp):
    B, QS, _ = x.shape
    y = jnp.einsum('btf,f->bt', x, tp['w_step']) + tp['b_step']     # fc_step
    pools = []
    for offset in range(N_OFFSETS):
        seg = y[:, offset:offset + N_CHUNKS * WINDOW]
        pools.append(seg.reshape(B, N_CHUNKS, WINDOW).max(axis=-1))
    cat = jnp.stack(pools, axis=2).reshape(B, N_CHUNKS * N_OFFSETS)  # (B, 600)
    h = jnp.maximum(cat @ tp['WA'].T + tp['bA'], 0.0)
    h = jnp.maximum(h @ tp['WB'].T + tp['bB'], 0.0)
    return h @ tp['WC'].T + tp['bC']


if __name__ == "__main__":
    B, QS, F = 2, MIN_QS, 7          # F = 7 input features, QS = 1204
    key = jax.random.PRNGKey(0)
    k_x, k_p = jax.random.split(key)
    x = jax.random.normal(k_x, (B, QS, F), jnp.float32)
    kernel_p, torch_p = init_params(k_p, num_feat=F)

    logits = forward(x, kernel_p)
    jax.block_until_ready(logits)

    ref = reference_forward(x, torch_p)

    assert logits.shape == (B, 2), logits.shape
    assert bool(jnp.all(jnp.isfinite(logits)))
    assert bool(jnp.allclose(logits, ref, rtol=5e-2, atol=5e-2)), (logits, ref)
    print("KERNEL_OK")
</pallas_src>

<mosaic_0001>
module attributes {stable_mosaic.version = 11 : i64} {
  func.func @_struct3_kernel(%arg0: memref<8xf32, #tpu.memory_space<smem>>, %arg1: memref<7x2x1204xf32, #tpu.memory_space<vmem>>, %arg2: memref<1195x128xf32, #tpu.memory_space<vmem>>, %arg3: memref<1x128xf32, #tpu.memory_space<vmem>>, %arg4: memref<128x32xf32, #tpu.memory_space<vmem>>, %arg5: memref<1x32xf32, #tpu.memory_space<vmem>>, %arg6: memref<32x2xf32, #tpu.memory_space<vmem>>, %arg7: memref<1x2xf32, #tpu.memory_space<vmem>>, %arg8: memref<2x2xf32, #tpu.memory_space<vmem>>, %arg9: memref<2x1204xf32, #tpu.memory_space<vmem>>) attributes {dimension_semantics = [], scalar_prefetch = 0 : i64, scratch_operands = 1 : i64, tpu.core_type = #tpu.core_type<tc>} {
    %c7 = arith.constant 7 : index
    %0 = memref.load %arg0[%c7] : memref<8xf32, #tpu.memory_space<smem>>
    %1 = vector.broadcast %0 : f32 to vector<2x1204xf32>
    %c0 = arith.constant 0 : index
    %c0_0 = arith.constant 0 : index
    %c0_1 = arith.constant 0 : index
    %2 = vector.load %arg1[%c0, %c0_0, %c0_1] : memref<7x2x1204xf32, #tpu.memory_space<vmem>>, vector<1x2x1204xf32>
    %3 = vector.shape_cast %2 : vector<1x2x1204xf32> to vector<2x1204xf32>
    %c0_2 = arith.constant 0 : index
    %4 = memref.load %arg0[%c0_2] : memref<8xf32, #tpu.memory_space<smem>>
    %5 = vector.broadcast %4 : f32 to vector<2x1204xf32>
    %6 = arith.mulf %3, %5 : vector<2x1204xf32>
    %7 = arith.addf %1, %6 : vector<2x1204xf32>
    %c1 = arith.constant 1 : index
    %c0_3 = arith.constant 0 : index
    %c0_4 = arith.constant 0 : index
    %8 = vector.load %arg1[%c1, %c0_3, %c0_4] : memref<7x2x1204xf32, #tpu.memory_space<vmem>>, vector<1x2x1204xf32>
    %9 = vector.shape_cast %8 : vector<1x2x1204xf32> to vector<2x1204xf32>
    %c1_5 = arith.constant 1 : index
    %10 = memref.load %arg0[%c1_5] : memref<8xf32, #tpu.memory_space<smem>>
    %11 = vector.broadcast %10 : f32 to vector<2x1204xf32>
    %12 = arith.mulf %9, %11 : vector<2x1204xf32>
    %13 = arith.addf %7, %12 : vector<2x1204xf32>
    %c2 = arith.constant 2 : index
    %c0_6 = arith.constant 0 : index
    %c0_7 = arith.constant 0 : index
    %14 = vector.load %arg1[%c2, %c0_6, %c0_7] : memref<7x2x1204xf32, #tpu.memory_space<vmem>>, vector<1x2x1204xf32>
    %15 = vector.shape_cast %14 : vector<1x2x1204xf32> to vector<2x1204xf32>
    %c2_8 = arith.constant 2 : index
    %16 = memref.load %arg0[%c2_8] : memref<8xf32, #tpu.memory_space<smem>>
    %17 = vector.broadcast %16 : f32 to vector<2x1204xf32>
    %18 = arith.mulf %15, %17 : vector<2x1204xf32>
    %19 = arith.addf %13, %18 : vector<2x1204xf32>
    %c3 = arith.constant 3 : index
    %c0_9 = arith.constant 0 : index
    %c0_10 = arith.constant 0 : index
    %20 = vector.load %arg1[%c3, %c0_9, %c0_10] : memref<7x2x1204xf32, #tpu.memory_space<vmem>>, vector<1x2x1204xf32>
    %21 = vector.shape_cast %20 : vector<1x2x1204xf32> to vector<2x1204xf32>
    %c3_11 = arith.constant 3 : index
    %22 = memref.load %arg0[%c3_11] : memref<8xf32, #tpu.memory_space<smem>>
    %23 = vector.broadcast %22 : f32 to vector<2x1204xf32>
    %24 = arith.mulf %21, %23 : vector<2x1204xf32>
    %25 = arith.addf %19, %24 : vector<2x1204xf32>
    %c4 = arith.constant 4 : index
    %c0_12 = arith.constant 0 : index
    %c0_13 = arith.constant 0 : index
    %26 = vector.load %arg1[%c4, %c0_12, %c0_13] : memref<7x2x1204xf32, #tpu.memory_space<vmem>>, vector<1x2x1204xf32>
    %27 = vector.shape_cast %26 : vector<1x2x1204xf32> to vector<2x1204xf32>
    %c4_14 = arith.constant 4 : index
    %28 = memref.load %arg0[%c4_14] : memref<8xf32, #tpu.memory_space<smem>>
    %29 = vector.broadcast %28 : f32 to vector<2x1204xf32>
    %30 = arith.mulf %27, %29 : vector<2x1204xf32>
    %31 = arith.addf %25, %30 : vector<2x1204xf32>
    %c5 = arith.constant 5 : index
    %c0_15 = arith.constant 0 : index
    %c0_16 = arith.constant 0 : index
    %32 = vector.load %arg1[%c5, %c0_15, %c0_16] : memref<7x2x1204xf32, #tpu.memory_space<vmem>>, vector<1x2x1204xf32>
    %33 = vector.shape_cast %32 : vector<1x2x1204xf32> to vector<2x1204xf32>
    %c5_17 = arith.constant 5 : index
    %34 = memref.load %arg0[%c5_17] : memref<8xf32, #tpu.memory_space<smem>>
    %35 = vector.broadcast %34 : f32 to vector<2x1204xf32>
    %36 = arith.mulf %33, %35 : vector<2x1204xf32>
    %37 = arith.addf %31, %36 : vector<2x1204xf32>
    %c6 = arith.constant 6 : index
    %c0_18 = arith.constant 0 : index
    %c0_19 = arith.constant 0 : index
    %38 = vector.load %arg1[%c6, %c0_18, %c0_19] : memref<7x2x1204xf32, #tpu.memory_space<vmem>>, vector<1x2x1204xf32>
    %39 = vector.shape_cast %38 : vector<1x2x1204xf32> to vector<2x1204xf32>
    %c6_20 = arith.constant 6 : index
    %40 = memref.load %arg0[%c6_20] : memref<8xf32, #tpu.memory_space<smem>>
    %41 = vector.broadcast %40 : f32 to vector<2x1204xf32>
    %42 = arith.mulf %39, %41 : vector<2x1204xf32>
    %43 = arith.addf %37, %42 : vector<2x1204xf32>
    %c0_21 = arith.constant 0 : index
    %c0_22 = arith.constant 0 : index
    %44 = vector.load %arg9[%c0_21, %c0_22] : memref<2x1204xf32, #tpu.memory_space<vmem>>, vector<2x1204xf32>
    tpu.vector_store %arg9[%c0_21, %c0_22], %43 {strides = array<i32>} : memref<2x1204xf32, #tpu.memory_space<vmem>>, vector<2x1204xf32>,
    %c0_23 = arith.constant 0 : index
    %c0_24 = arith.constant 0 : index
    %45 = vector.load %arg9[%c0_23, %c0_24] : memref<2x1204xf32, #tpu.memory_space<vmem>>, vector<2x1195xf32>
    %c0_25 = arith.constant 0 : index
    %c1_26 = arith.constant 1 : index
    %46 = vector.load %arg9[%c0_25, %c1_26] : memref<2x1204xf32, #tpu.memory_space<vmem>>, vector<2x1195xf32>
    %47 = arith.maximumf %45, %46 : vector<2x1195xf32>
    %c0_27 = arith.constant 0 : index
    %c2_28 = arith.constant 2 : index
    %48 = vector.load %arg9[%c0_27, %c2_28] : memref<2x1204xf32, #tpu.memory_space<vmem>>, vector<2x1195xf32>
    %49 = arith.maximumf %47, %48 : vector<2x1195xf32>
    %c0_29 = arith.constant 0 : index
    %c3_30 = arith.constant 3 : index
    %50 = vector.load %arg9[%c0_29, %c3_30] : memref<2x1204xf32, #tpu.memory_space<vmem>>, vector<2x1195xf32>
    %51 = arith.maximumf %49, %50 : vector<2x1195xf32>
    %c0_31 = arith.constant 0 : index
    %c4_32 = arith.constant 4 : index
    %52 = vector.load %arg9[%c0_31, %c4_32] : memref<2x1204xf32, #tpu.memory_space<vmem>>, vector<2x1195xf32>
    %53 = arith.maximumf %51, %52 : vector<2x1195xf32>
    %c0_33 = arith.constant 0 : index
    %c5_34 = arith.constant 5 : index
    %54 = vector.load %arg9[%c0_33, %c5_34] : memref<2x1204xf32, #tpu.memory_space<vmem>>, vector<2x1195xf32>
    %55 = arith.maximumf %53, %54 : vector<2x1195xf32>
    %c0_35 = arith.constant 0 : index
    %c6_36 = arith.constant 6 : index
    %56 = vector.load %arg9[%c0_35, %c6_36] : memref<2x1204xf32, #tpu.memory_space<vmem>>, vector<2x1195xf32>
    %57 = arith.maximumf %55, %56 : vector<2x1195xf32>
    %c0_37 = arith.constant 0 : index
    %c7_38 = arith.constant 7 : index
    %58 = vector.load %arg9[%c0_37, %c7_38] : memref<2x1204xf32, #tpu.memory_space<vmem>>, vector<2x1195xf32>
    %59 = arith.maximumf %57, %58 : vector<2x1195xf32>
    %c0_39 = arith.constant 0 : index
    %c8 = arith.constant 8 : index
    %60 = vector.load %arg9[%c0_39, %c8] : memref<2x1204xf32, #tpu.memory_space<vmem>>, vector<2x1195xf32>
    %61 = arith.maximumf %59, %60 : vector<2x1195xf32>
    %c0_40 = arith.constant 0 : index
    %c9 = arith.constant 9 : index
    %62 = vector.load %arg9[%c0_40, %c9] : memref<2x1204xf32, #tpu.memory_space<vmem>>, vector<2x1195xf32>
    %63 = arith.maximumf %61, %62 : vector<2x1195xf32>
    %c0_41 = arith.constant 0 : index
    %c0_42 = arith.constant 0 : index
    %64 = vector.load %arg2[%c0_41, %c0_42] : memref<1195x128xf32, #tpu.memory_space<vmem>>, vector<1195x128xf32>
    %cst = arith.constant dense<0.000000e+00> : vector<2x128xf32>
    %65 = tpu.matmul %63, %64, %cst {dimension_numbers = #tpu.dot_dimension_numbers<[1], [0], [0], [1], [0, 0, 1, 1], [], []>} : vector<2x1195xf32>, vector<1195x128xf32>, vector<2x128xf32> -> vector<2x128xf32>
    %c0_43 = arith.constant 0 : index
    %c0_44 = arith.constant 0 : index
    %66 = vector.load %arg3[%c0_43, %c0_44] : memref<1x128xf32, #tpu.memory_space<vmem>>, vector<1x128xf32>
    %67 = vector.broadcast %66 : vector<1x128xf32> to vector<2x128xf32>
    %68 = arith.addf %65, %67 : vector<2x128xf32>
    %cst_45 = arith.constant 0.000000e+00 : f32
    %69 = vector.broadcast %cst_45 : f32 to vector<2x128xf32>
    %70 = arith.maximumf %68, %69 : vector<2x128xf32>
    %c0_46 = arith.constant 0 : index
    %c0_47 = arith.constant 0 : index
    %71 = vector.load %arg4[%c0_46, %c0_47] : memref<128x32xf32, #tpu.memory_space<vmem>>, vector<128x32xf32>
    %cst_48 = arith.constant dense<0.000000e+00> : vector<2x32xf32>
    %72 = tpu.matmul %70, %71, %cst_48 {dimension_numbers = #tpu.dot_dimension_numbers<[1], [0], [0], [1], [0, 0, 1, 1], [], []>} : vector<2x128xf32>, vector<128x32xf32>, vector<2x32xf32> -> vector<2x32xf32>
    %c0_49 = arith.constant 0 : index
    %c0_50 = arith.constant 0 : index
    %73 = vector.load %arg5[%c0_49, %c0_50] : memref<1x32xf32, #tpu.memory_space<vmem>>, vector<1x32xf32>
    %74 = vector.broadcast %73 : vector<1x32xf32> to vector<2x32xf32>
    %75 = arith.addf %72, %74 : vector<2x32xf32>
    %cst_51 = arith.constant 0.000000e+00 : f32
    %76 = vector.broadcast %cst_51 : f32 to vector<2x32xf32>
    %77 = arith.maximumf %75, %76 : vector<2x32xf32>
    %c0_52 = arith.constant 0 : index
    %c0_53 = arith.constant 0 : index
    %78 = vector.load %arg6[%c0_52, %c0_53] : memref<32x2xf32, #tpu.memory_space<vmem>>, vector<32x2xf32>
    %cst_54 = arith.constant dense<0.000000e+00> : vector<2x2xf32>
    %79 = tpu.matmul %77, %78, %cst_54 {dimension_numbers = #tpu.dot_dimension_numbers<[1], [0], [0], [1], [0, 0, 1, 1], [], []>} : vector<2x32xf32>, vector<32x2xf32>, vector<2x2xf32> -> vector<2x2xf32>
    %c0_55 = arith.constant 0 : index
    %c0_56 = arith.constant 0 : index
    %80 = vector.load %arg7[%c0_55, %c0_56] : memref<1x2xf32, #tpu.memory_space<vmem>>, vector<1x2xf32>
    %81 = vector.broadcast %80 : vector<1x2xf32> to vector<2x2xf32>
    %82 = arith.addf %79, %81 : vector<2x2xf32>
    %c0_57 = arith.constant 0 : index
    %c0_58 = arith.constant 0 : index
    %83 = vector.load %arg8[%c0_57, %c0_58] : memref<2x2xf32, #tpu.memory_space<vmem>>, vector<2x2xf32>
    tpu.vector_store %arg8[%c0_57, %c0_58], %82 {strides = array<i32>} : memref<2x2xf32, #tpu.memory_space<vmem>>, vector<2x2xf32>,
    return
  }
}

</mosaic_0001>

<bundles_post_ra>
// kernel: struct3_forward.1
= control target key start
LH: loop header
LB: loop body
LE: loop exit
PB: predicated region body
PF: predicated region fallthrough
CT: control target
= control target key end

     0   :  { %13 = vsyncpa [#allocation6], 0  ;;  %s2100_s0 = inlined_call_operand.vmem [shape: f32[8], index: 0, kind: input, shape index: {}]   ;;  %s2101_s1 = inlined_call_operand.vmem [shape: f32[7,2,1204], index: 1, kind: input, shape index: {}]   ;;  %s2102_s2 = inlined_call_operand.hbm [shape: f32[1195,128], index: 2, kind: input, shape index: {}]   ;;  %s2103_s3 = inlined_call_operand.vmem [shape: f32[1,128], index: 3, kind: input, shape index: {}]   ;;  %s2104_s4 = inlined_call_operand.vmem [shape: f32[128,32], index: 4, kind: input, shape index: {}]   ;;  %s2105_s5 = inlined_call_operand.vmem [shape: f32[1,32], index: 5, kind: input, shape index: {}]   ;;  %s2106_s6 = inlined_call_operand.vmem [shape: f32[32,2], index: 6, kind: input, shape index: {}]   ;;  %s2107_s7 = inlined_call_operand.vmem [shape: f32[1,2], index: 7, kind: input, shape index: {}]   ;;  %s2108_s8 = inlined_call_operand.hbm [shape: f32[2,2], index: 8, kind: output, shape index: {}]  }
   0x1   :  { %14 = vsyncpa [#allocation4], 0 }
   0x2   :  { %15 = vsyncpa [#allocation5], 0  ;;  %s22_s29 = sshll.u32 %s2100_s0, 4  ;;  %s23_s29 = int_to_ptr.vmem [resolvable:$true] %s22_s29 }
   0x3   :  { %s1560_s30 = scalar_lea.vmem %s23_s29, 16  ;;  %p1565_p1 = scmp.lt.s32.totalorder %s23_s29, %s23_s29 }
   0x4   :  { %p1561_p0 = scmp.ne.s32.totalorder %s23_s29, %s1560_s30  ;;  %p1566_p2 = scmp.lt.s32.totalorder %s1560_s30, %s1560_s30 }
   0x6   :  { %p1567_p3 = por %p1566_p2, %p1565_p1 }
   0x8   :  { %p1568_p4 = pnand %p1567_p3, %p1561_p0 }
   0xa   :  { %1571 = shalt.err (!%p1568_p4)
}
   0xb   :  { %s1622_s9 = smov [#allocation3]   ;;  %s1623_s10 = smov [#allocation7]  }
   0xc   :  { %25 = dma.vmem_to_smem %s23_s29, 16, %s1622_s9, [#allocation6]  }
   0xd   :  { %s33_s11 = sshll.u32 %s1623_s10, 4  ;;  %s1572_s14 = scalar_lea.hbm %s2102_s2, 19200  ;;  %s34_s11 = int_to_ptr.vmem [resolvable:$true] %s33_s11 }
   0xe   :  { %p1573_p5 = scmp.ne.s32.totalorder %s2102_s2, %s1572_s14  ;;  %p1576_p6 = scmp.lt.u32.totalorder %s1572_s14, %s2102_s2 }
  0x10   :  { %p1578_p7 = pnand %p1576_p6, %p1573_p5 }
  0x12   :  { %1581 = shalt.err (!%p1578_p7)
}
  0x13   :  { %s1582_s18 = scalar_lea.vmem %s34_s11, 19200  ;;  %p1587_p9 = scmp.lt.s32.totalorder %s34_s11, %s34_s11 }
  0x14   :  { %p1583_p8 = scmp.ne.s32.totalorder %s34_s11, %s1582_s18  ;;  %p1588_p10 = scmp.lt.s32.totalorder %s1582_s18, %s1582_s18 }
  0x16   :  { %p1589_p11 = por %p1588_p10, %p1587_p9 }
  0x18   :  { %p1590_p12 = pnand %p1589_p11, %p1583_p8 }
  0x1a   :  { %1593 = shalt.err (!%p1590_p12)
}
  0x1b   :  { %s1624_s19 = smov 128   ;;  %s1625_s20 = smov 8  }
  0x1c   :  { %39 = dma.hbm_to_vmem [thread:$0]  %s2102_s2, 19200, %s34_s11, [#allocation4], %s1624_s19, %s1624_s19, %s1625_s20  }
  0x1d   :  { %1616 = dma.done.wait [#allocation6], 16  }
  0x1e   :  { %1617 = vsyncadd [#allocation6], 4294967280 }
  0x1f   :  { %1618 = dma.done.wait [#allocation4], 19200  }
  0x20   :  { %1619 = vsyncadd [#allocation4], 4294948096 }
  0x21   :  { %56 = sfence }
  0x22   :  { %s1110_s23 = sld [smem:[#allocation3 + $0x7]]  ;;  %s62_s24 = sld [smem:[#allocation3]]  ;;  %v59_v0 = vld [vmem:[%s2101_s1] sm:$0xff]  ;;  %v60_v1 = vld [vmem:[%s2101_s1 + $0x8] sm:$0xff]  ;;  %v1111_v2 = vld [vmem:[%s2101_s1 + $0x14] sm:$0xff]  ;;  %vm144_vm0 = vcmask 1041408  }
  0x23   :  { %s1114_s25 = sld [smem:[#allocation3 + $0x1]]  ;;  %s1118_s26 = sld [smem:[#allocation3 + $0x2]]  ;;  %v1115_v5 = vld [vmem:[%s2101_s1 + $0x28] sm:$0xff]  ;;  %v1112_v10 = vld [vmem:[%s2101_s1 + $0x1c] sm:$0xff]  ;;  %v1116_v14 = vld [vmem:[%s2101_s1 + $0x30] sm:$0xff]  ;;  %vm145_vm1 = vcmask 420866  }
  0x24   :  { %s1122_s27 = sld [smem:[#allocation3 + $0x3]]  ;;  %s1126_s28 = sld [smem:[#allocation3 + $0x4]]  ;;  %v1119_v12 = vld [vmem:[%s2101_s1 + $0x3c] sm:$0xff]  ;;  %v1120_v17 = vld [vmem:[%s2101_s1 + $0x44] sm:$0xff]  ;;  %v1123_v18 = vld [vmem:[%s2101_s1 + $0x50] sm:$0xff]  ;;  %vm163_vm3 = vcmask 1045504  }
  0x25   :  { %s1704_s9 = sld [smem:[#allocation3 + $0x5]]  ;;  %s1715_s15 = sld [smem:[#allocation3 + $0x6]]  ;;  %v61_v22 = vld [vmem:[%s2101_s1 + $0x10] sm:$0xf]  ;;  %v1113_v23 = vld [vmem:[%s2101_s1 + $0x24] sm:$0xf]  ;;  %vm1779_vm2 = vmor %vm145_vm1, %vm144_vm0 }
  0x26   :  { %v1124_v27 = vld [vmem:[%s2101_s1 + $0x58] sm:$0xff]  ;;  %v1127_v28 = vld [vmem:[%s2101_s1 + $0x64] sm:$0xff]  ;;  %v1128_v35 = vld [vmem:[%s2101_s1 + $0x6c] sm:$0xff]  ;;  %s1630_s29 = smov 123   ;;  %s1631_s30 = smov 122   ;;  %vm165_vm4 = vcmask 1039360  }
  0x27   :  { %v1117_v32 = vld [vmem:[%s2101_s1 + $0x38] sm:$0xf]  ;;  %v1121_v42 = vld [vmem:[%s2101_s1 + $0x4c] sm:$0xf]  ;;  %v1132_v45 = vld [vmem:[%s2101_s1 + $0x80] sm:$0xff]  ;;  %s1632_s10 = smov 121  }
  0x28   :  { %v58_v3 = vstv %s1110_s23  ;;  %v63_v4 = vstv %s62_s24  ;;  %v1131_v38 = vld [vmem:[%s2101_s1 + $0x78] sm:$0xff]  ;;  %v1125_v50 = vld [vmem:[%s2101_s1 + $0x60] sm:$0xf]  ;;  %s1633_s12 = smov 120   ;;  %vm186_vm5 = vcmask 1031168   ;;  %vm207_vm6 = vcmask 1022976  }
  0x29   :  { %v64_v6 = vmul.f32 %v63_v4, %v59_v0  ;;  %v75_v7 = vstv %s1114_s25  ;;  %v87_v8 = vstv %s1118_s26  ;;  %v65_v9 = vmul.f32 %v63_v4, %v60_v1  ;;  %v360_v55 = vld [vmem:[#allocation7 + $0x80] sm:$0xff]  ;;  %v361_v56 = vld [vmem:[#allocation7 + $0x88] sm:$0xff]  ;;  %s1627_s25 = smov 127   ;;  %s1628_s26 = smov 125  }
  0x2a   :  { %v76_v11 = vmul.f32 %v1111_v2, %v75_v7  ;;  %v99_v13 = vstv %s1122_s27  ;;  %v88_v16 = vmul.f32 %v1115_v5, %v87_v8  ;;  %v111_v19 = vstv %s1126_s28  ;;  %v1129_v59 = vld [vmem:[%s2101_s1 + $0x74] sm:$0xf]  ;;  %v345_v62 = vld [vmem:[#allocation7 + $0x8] sm:$0xff]  ;;  %s1629_s27 = smov 124   ;;  %s1634_s28 = smov 119  }
  0x2b   :  { %v67_v15 = vadd.f32 %v64_v6, %v58_v3  ;;  %v68_v20 = vadd.f32 %v65_v9, %v58_v3  ;;  %v77_v21 = vmul.f32 %v1112_v10, %v75_v7  ;;  %v100_v25 = vmul.f32 %v1119_v12, %v99_v13  ;;  %v344_v61 = vld [vmem:[#allocation7] sm:$0xff]  ;;  %v1133_v6 = vld [vmem:[%s2101_s1 + $0x88] sm:$0xf]  ;;  %v377_v9 = vld [vmem:[#allocation7 + $0x108] sm:$0xff]  ;;  %s1626_s1 = smov 126  }
  0x2c   :  { %v89_v26 = vmul.f32 %v1116_v14, %v87_v8  ;;  %v123_v29 = vstv %s1704_s9  ;;  %v101_v31 = vmul.f32 %v1120_v17, %v99_v13  ;;  %v112_v34 = vmul.f32 %v1123_v18, %v111_v19  ;;  %v362_v14 = vld [vmem:[#allocation7 + $0x90] sm:$0xff] }
  0x2d   :  { %v79_v24 = vadd.f32 %v76_v11, %v67_v15  ;;  %v80_v30 = vadd.f32 %v77_v21, %v68_v20  ;;  %v66_v36 = vmul.f32 %v63_v4, %v61_v22  ;;  %v78_v37 = vmul.f32 %v1113_v23, %v75_v7  ;;  %v393_v4 = vld [vmem:[#allocation7 + $0x188] sm:$0xff]  ;;  %v363_v15 = vld [vmem:[#allocation7 + $0x98] sm:$0xff]  ;;  %v346_v18 = vld [vmem:[#allocation7 + $0x10] sm:$0xff] }
  0x2e   :  { %v135_v39 = vstv %s1715_s15  ;;  %v113_v41 = vmul.f32 %v1124_v27, %v111_v19  ;;  %v124_v44 = vmul.f32 %v1127_v28, %v123_v29  ;;  %v90_v47 = vmul.f32 %v1117_v32, %v87_v8  ;;  %v376_v8 = vld [vmem:[#allocation7 + $0x100] sm:$0xff]  ;;  %v394_v23 = vld [vmem:[#allocation7 + $0x190] sm:$0xff]  ;;  %v379_v27 = vld [vmem:[#allocation7 + $0x118] sm:$0xff] }
  0x2f   :  { %v91_v33 = vadd.f32 %v88_v16, %v79_v24  ;;  %v92_v40 = vadd.f32 %v89_v26, %v80_v30  ;;  %v69_v46 = vadd.f32 %v66_v36, %v58_v3  ;;  %v125_v49 = vmul.f32 %v1128_v35, %v123_v29  ;;  %v392_v3 = vld [vmem:[#allocation7 + $0x180] sm:$0xff]  ;;  %v395_v24 = vld [vmem:[#allocation7 + $0x198] sm:$0xff]  ;;  %v378_v26 = vld [vmem:[#allocation7 + $0x110] sm:$0xff] }
  0x30   :  { %v136_v52 = vmul.f32 %v1131_v38, %v135_v39  ;;  %v102_v54 = vmul.f32 %v1121_v42, %v99_v13  ;;  %v137_v58 = vmul.f32 %v1132_v45, %v135_v39  ;;  %v1349_v60 = vpack.c.bf16 %v361_v56, %v360_v55  ;;  %v364_v30 = vld [vmem:[#allocation7 + $0xa0] sm:$0xff]  ;;  %v349_v35 = vld [vmem:[#allocation7 + $0x28] sm:$0xff]  ;;  %v367_v45 = vld [vmem:[#allocation7 + $0xb8] sm:$0xff] }
  0x31   :  { %v103_v43 = vadd.f32 %v100_v25, %v91_v33  ;;  %v104_v48 = vadd.f32 %v101_v31, %v92_v40  ;;  %v81_v53 = vadd.f32 %v78_v37, %v69_v46  ;;  %v114_v1 = vmul.f32 %v1125_v50, %v111_v19  ;;  %v347_v19 = vld [vmem:[#allocation7 + $0x18] sm:$0xff]  ;;  %v365_v31 = vld [vmem:[#allocation7 + $0xa8] sm:$0xff]  ;;  %v396_v38 = vld [vmem:[#allocation7 + $0x1a0] sm:$0xff] }
  0x32   :  { %v1351_v2 = vpack.c.bf16 %v345_v62, %v344_v61  ;;  %1350 = vmatprep.subr.bf16.mxu0 %v1349_v60  ;;  %v1381_v7 = vpack.c.bf16 %v393_v4, %v392_v3  ;;  %v126_v12 = vmul.f32 %v1129_v59, %v123_v29  ;;  %v1383_v13 = vpack.c.bf16 %v377_v9, %v376_v8  ;;  %v381_v42 = vld [vmem:[#allocation7 + $0x128] sm:$0xff]  ;;  %v398_v50 = vld [vmem:[#allocation7 + $0x1b0] sm:$0xff]  ;;  %v368_v56 = vld [vmem:[#allocation7 + $0xc0] sm:$0xff] }
  0x33   :  { %v115_v51 = vadd.f32 %v112_v34, %v103_v43  ;;  %v116_v57 = vadd.f32 %v113_v41, %v104_v48  ;;  %v93_v0 = vadd.f32 %v90_v47, %v81_v53  ;;  %v1353_v17 = vpack.c.bf16 %v363_v15, %v362_v14  ;;  %v348_v34 = vld [vmem:[#allocation7 + $0x20] sm:$0xff]  ;;  %v350_v47 = vld [vmem:[#allocation7 + $0x30] sm:$0xff]  ;;  %v351_v48 = vld [vmem:[#allocation7 + $0x38] sm:$0xff] }
  0x34   :  { %1352 = vmatpush3.bf16.msra.mxu0 %v1351_v2  ;;  %1382 = vmatprep.subr.bf16.mxu1 %v1381_v7  ;;  %v138_v21 = vmul.f32 %v1133_v6, %v135_v39  ;;  %v1355_v22 = vpack.c.bf16 %v347_v19, %v346_v18  ;;  %v1385_v25 = vpack.c.bf16 %v395_v24, %v394_v23  ;;  %v397_v39 = vld [vmem:[#allocation7 + $0x1a8] sm:$0xff]  ;;  %v380_v41 = vld [vmem:[#allocation7 + $0x120] sm:$0xff]  ;;  %v382_v53 = vld [vmem:[#allocation7 + $0x130] sm:$0xff]  ;;  %vm228_vm7 = vcmask 1014784  }
  0x35   :  { %v127_v63 = vadd.f32 %v124_v44, %v115_v51  ;;  %v128_v5 = vadd.f32 %v125_v49, %v116_v57  ;;  %v105_v11 = vadd.f32 %v102_v54, %v93_v0  ;;  %1384 = vmatpush3.bf16.msra.mxu1 %v1383_v13  ;;  %1354 = vmatprep.subr.bf16.mxu0 %v1353_v17  ;;  %v366_v44 = vld [vmem:[#allocation7 + $0xb0] sm:$0xff]  ;;  %v399_v51 = vld [vmem:[#allocation7 + $0x1b8] sm:$0xff]  ;;  %v369_v57 = vld [vmem:[#allocation7 + $0xc8] sm:$0xff]  ;;  %vm249_vm8 = vcmask 1006592  }
  0x36   :  { %v1387_v29 = vpack.c.bf16 %v379_v27, %v378_v26  ;;  %1386 = vmatprep.subr.bf16.mxu1 %v1385_v25  ;;  %v1357_v33 = vpack.c.bf16 %v365_v31, %v364_v30  ;;  %v1359_v37 = vpack.c.bf16 %v349_v35, %v348_v34  ;;  %v1389_v40 = vpack.c.bf16 %v397_v39, %v396_v38  ;;  %v383_v54 = vld [vmem:[#allocation7 + $0x138] sm:$0xff]  ;;  %v352_v59 = vld [vmem:[#allocation7 + $0x40] sm:$0xff]  ;;  %v353_v60 = vld [vmem:[#allocation7 + $0x48] sm:$0xff] }
  0x37   :  { %v1770_v10 = vadd.f32 %v136_v52, %v127_v63  ;;  %v1772_v16 = vadd.f32 %v137_v58, %v128_v5  ;;  %v117_v20 = vadd.f32 %v114_v1, %v105_v11  ;;  %v1391_v43 = vpack.c.bf16 %v381_v42, %v380_v41  ;;  %v400_v62 = vld [vmem:[#allocation7 + $0x1c0] sm:$0xff]  ;;  %v401_v63 = vld [vmem:[#allocation7 + $0x1c8] sm:$0xff]  ;;  %v370_v4 = vld [vmem:[#allocation7 + $0xd0] sm:$0xff] }
  0x38   :  { %1356 = vmatpush3.bf16.msra.mxu0 %v1355_v22  ;;  %v1361_v46 = vpack.c.bf16 %v367_v45, %v366_v44  ;;  %v1363_v49 = vpack.c.bf16 %v351_v48, %v350_v47  ;;  %v1393_v52 = vpack.c.bf16 %v399_v51, %v398_v50  ;;  %v1395_v55 = vpack.c.bf16 %v383_v54, %v382_v53  ;;  %v384_v1 = vld [vmem:[#allocation7 + $0x140] sm:$0xff]  ;;  %v385_v2 = vld [vmem:[#allocation7 + $0x148] sm:$0xff]  ;;  %v371_v5 = vld [vmem:[#allocation7 + $0xd8] sm:$0xff] }
  0x39   :  { %176 = vrot.lane.b32.xlu1 %v1770_v10, %s1626_s1  ;;  %154 = vrot.lane.b32.xlu0 %v1770_v10, %s1627_s25  ;;  %v129_v28 = vadd.f32 %v126_v12, %v117_v20  ;;  %v1365_v58 = vpack.c.bf16 %v369_v57, %v368_v56  ;;  %v1367_v61 = vpack.c.bf16 %v353_v60, %v352_v59  ;;  %v354_v7 = vld [vmem:[#allocation7 + $0x50] sm:$0xff]  ;;  %v355_v8 = vld [vmem:[#allocation7 + $0x58] sm:$0xff]  ;;  %v372_v18 = vld [vmem:[#allocation7 + $0xe0] sm:$0xff]  ;;  %vm270_vm9 = vcmask 998400  }
  0x3a   :  { %1388 = vmatpush3.bf16.msra.mxu1 %v1387_v29  ;;  %1358 = vmatprep.subr.bf16.mxu0 %v1357_v33  ;;  %v1397_v0 = vpack.c.bf16 %v401_v63, %v400_v62  ;;  %v1399_v3 = vpack.c.bf16 %v385_v2, %v384_v1  ;;  %v1369_v6 = vpack.c.bf16 %v371_v5, %v370_v4  ;;  %v402_v11 = vld [vmem:[#allocation7 + $0x1d0] sm:$0xff]  ;;  %v403_v12 = vld [vmem:[#allocation7 + $0x1d8] sm:$0xff]  ;;  %v373_v19 = vld [vmem:[#allocation7 + $0xe8] sm:$0xff]  ;;  %vm291_vm10 = vcmask 990208  }
  0x3b   :  { %v141_v36 = vadd.f32 %v138_v21, %v129_v28  ;;  %1390 = vmatprep.subr.bf16.mxu1 %v1389_v40  ;;  %v1371_v9 = vpack.c.bf16 %v355_v8, %v354_v7  ;;  %v1401_v13 = vpack.c.bf16 %v403_v12, %v402_v11  ;;  %v386_v14 = vld [vmem:[#allocation7 + $0x150] sm:$0xff]  ;;  %v387_v15 = vld [vmem:[#allocation7 + $0x158] sm:$0xff]  ;;  %v1373_v20 = vpack.c.bf16 %v373_v19, %v372_v18  ;;  %v356_v21 = vld [vmem:[#allocation7 + $0x60] sm:$0xff] }
  0x3c   :  { %1360 = vmatpush3.bf16.msra.mxu0 %v1359_v37  ;;  %v1403_v17 = vpack.c.bf16 %v387_v15, %v386_v14  ;;  %v357_v22 = vld [vmem:[#allocation7 + $0x68] sm:$0xff]  ;;  %v404_v24 = vld [vmem:[#allocation7 + $0x1e0] sm:$0xff]  ;;  %v374_v30 = vld [vmem:[#allocation7 + $0xf0] sm:$0xff]  ;;  %vm312_vm11 = vcmask 982016   ;;  %vm333_vm12 = vcmask 973824   ;;  %vm555_vm13 = vcmask 351232  }
  0x3d   :  { %178 = vrot.lane.b32.xlu1 %v1772_v16, %s1626_s1  ;;  %156 = vrot.lane.b32.xlu0 %v1772_v16, %s1627_s25  ;;  %147 = vst.msk [vmem:[#allocation2 + $0x10] sm:$0xf] %vm1779_vm2, %v141_v36  ;;  %v1375_v23 = vpack.c.bf16 %v357_v22, %v356_v21  ;;  %v405_v25 = vld [vmem:[#allocation7 + $0x1e8] sm:$0xff]  ;;  %v388_v27 = vld [vmem:[#allocation7 + $0x160] sm:$0xff]  ;;  %v375_v31 = vld [vmem:[#allocation7 + $0xf8] sm:$0xff]  ;;  %vm558_vm14 = vcmask 1042432  }
  0x3e   :  { %1392 = vmatpush3.bf16.msra.mxu1 %v1391_v43  ;;  %1362 = vmatprep.subr.bf16.mxu0 %v1361_v46  ;;  %v1405_v26 = vpack.c.bf16 %v405_v25, %v404_v24  ;;  %v389_v28 = vld [vmem:[#allocation7 + $0x168] sm:$0xff]  ;;  %v1377_v32 = vpack.c.bf16 %v375_v31, %v374_v30  ;;  %v358_v33 = vld [vmem:[#allocation7 + $0x70] sm:$0xff]  ;;  %v359_v34 = vld [vmem:[#allocation7 + $0x78] sm:$0xff]  ;;  %vm1637_vm15 = vmmov 1   ;;  %vm1638_vm1 = vmmov 0  }
  0x3f   :  { %1394 = vmatprep.subr.bf16.mxu1 %v1393_v52  ;;  %v1407_v29 = vpack.c.bf16 %v389_v28, %v388_v27  ;;  %v1379_v35 = vpack.c.bf16 %v359_v34, %v358_v33  ;;  %v406_v36 = vld [vmem:[#allocation7 + $0x1f0] sm:$0xff]  ;;  %v407_v37 = vld [vmem:[#allocation7 + $0x1f8] sm:$0xff]  ;;  %v424_v42 = vld [vmem:[#allocation7 + $0x280] sm:$0xff]  ;;  %v1635_v33 = vmov 1983009808   ;;  %vm1018_vm2 = vcmask 261120  }
  0x40   :  { %1364 = vmatpush3.bf16.msra.mxu0 %v1363_v49  ;;  %v1409_v38 = vpack.c.bf16 %v407_v37, %v406_v36  ;;  %v390_v39 = vld [vmem:[#allocation7 + $0x170] sm:$0xff]  ;;  %v391_v40 = vld [vmem:[#allocation7 + $0x178] sm:$0xff]  ;;  %v425_v43 = vld [vmem:[#allocation7 + $0x288] sm:$0xff]  ;;  %v506_v34 = vunpack.c.l.s4 %v1635_v33 }
  0x41   :  { %199 = vrot.lane.b32.xlu1 %v1772_v16, %s1628_s26  ;;  %197 = vrot.lane.b32.xlu0 %v1770_v10, %s1628_s26  ;;  %v1411_v41 = vpack.c.bf16 %v391_v40, %v390_v39  ;;  %v1413_v44 = vpack.c.bf16 %v425_v43, %v424_v42  ;;  %v456_v45 = vld [vmem:[#allocation7 + $0x380] sm:$0xff]  ;;  %v457_v46 = vld [vmem:[#allocation7 + $0x388] sm:$0xff]  ;;  %vm1509_vm0 = vmpackc.low %vm558_vm14, %vm1637_vm15 }
  0x42   :  { %1396 = vmatpush3.bf16.msra.mxu1 %v1395_v55  ;;  %1366 = vmatprep.subr.bf16.mxu0 %v1365_v58  ;;  %v1445_v47 = vpack.c.bf16 %v457_v46, %v456_v45  ;;  %v507_v45 = vunpack.c.0.s8 %v506_v34  ;;  %v410_v34 = vld [vmem:[#allocation7 + $0x210] sm:$0xff] }
  0x43   :  { %1398 = vmatprep.subr.bf16.mxu1 %v1397_v0 }
  0x44   :  { %1368 = vmatpush3.bf16.msra.mxu0 %v1367_v61  ;;  %v1813_v48 = vld [vmem:[#allocation2 + $0x10] sm:$0xf] }
  0x45   :  { %220 = vrot.lane.b32.xlu1 %v1772_v16, %s1629_s27  ;;  %218 = vrot.lane.b32.xlu0 %v1770_v10, %s1629_s27 }
  0x46   :  { %1400 = vmatpush3.bf16.msra.mxu1 %v1399_v3  ;;  %1370 = vmatprep.subr.bf16.mxu0 %v1369_v6 }
  0x47   :  { %1402 = vmatprep.subr.bf16.mxu1 %v1401_v13 }
  0x48   :  { %1372 = vmatpush3.bf16.msra.mxu0 %v1371_v9 }
  0x49   :  { %241 = vrot.lane.b32.xlu1 %v1772_v16, %s1630_s29  ;;  %239 = vrot.lane.b32.xlu0 %v1770_v10, %s1630_s29 }
  0x4a   :  { %1404 = vmatpush3.bf16.msra.mxu1 %v1403_v17  ;;  %1374 = vmatprep.subr.bf16.mxu0 %v1373_v20 }
  0x4b   :  { %1406 = vmatprep.subr.bf16.mxu1 %v1405_v26 }
  0x4c   :  { %1376 = vmatpush3.bf16.msra.mxu0 %v1375_v23 }
  0x4d   :  { %262 = vrot.lane.b32.xlu1 %v1772_v16, %s1631_s30  ;;  %260 = vrot.lane.b32.xlu0 %v1770_v10, %s1631_s30 }
  0x4e   :  { %1408 = vmatpush3.bf16.msra.mxu1 %v1407_v29  ;;  %1378 = vmatprep.subr.bf16.mxu0 %v1377_v32 }
  0x4f   :  { %1410 = vmatprep.subr.bf16.mxu1 %v1409_v38 }
  0x50   :  { %1380 = vmatpush3.bf16.msra.mxu0 %v1379_v35  ;;  %v508_v35 = vlaneseq }
  0x51   :  { %283 = vrot.lane.b32.xlu1 %v1772_v16, %s1632_s10  ;;  %281 = vrot.lane.b32.xlu0 %v1770_v10, %s1632_s10 }
  0x52   :  { %1412 = vmatpush3.bf16.msra.mxu1 %v1411_v41  ;;  %1414 = vmatprep.subr.bf16.mxu0 %v1413_v44  ;;  %v509_v46 = vshrl.u32 %v508_v35, 7  ;;  %v411_v35 = vld [vmem:[#allocation7 + $0x218] sm:$0xff] }
  0x53   :  { %1446 = vmatprep.subr.bf16.mxu1 %v1445_v47 }
  0x55   :  { %304 = vrot.lane.b32.xlu1 %v1772_v16, %s1633_s12  ;;  %302 = vrot.lane.b32.xlu0 %v1770_v10, %s1633_s12 }
  0x59   :  { %325 = vrot.lane.b32.xlu1 %v1772_v16, %s1634_s28  ;;  %323 = vrot.lane.b32.xlu0 %v1770_v10, %s1634_s28 }
  0x5d   :  { %180 = vrot.lane.b32.xlu1 %v1813_v48, %s1626_s1  ;;  %158 = vrot.lane.b32.xlu0 %v1813_v48, %s1627_s25 }
  0x61   :  { %222 = vrot.lane.b32.xlu1 %v1813_v48, %s1629_s27  ;;  %201 = vrot.lane.b32.xlu0 %v1813_v48, %s1628_s26  ;;  %s1640_s27 = smov [#allocation8]  }
  0x65   :  { %264 = vrot.lane.b32.xlu1 %v1813_v48, %s1631_s30  ;;  %243 = vrot.lane.b32.xlu0 %v1813_v48, %s1630_s29  ;;  %s1100_s29 = sshll.u32 %s1640_s27, 4  ;;  %s1101_s29 = int_to_ptr.vmem [resolvable:$true] %s1100_s29 }
  0x66   :  { %p1599_p0 = scmp.lt.s32.totalorder %s1101_s29, %s1101_s29 }
  0x69   :  { %306 = vrot.lane.b32.xlu1 %v1813_v48, %s1633_s12  ;;  %285 = vrot.lane.b32.xlu0 %v1813_v48, %s1632_s10 }
  0x6d   :  { %327 = vrot.lane.b32.xlu0 %v1813_v48, %s1634_s28 }
  0xab   :  { %v177_v49 = vpop.permute.xlu1 %176  ;;  %v155_v50 = vpop.permute.xlu0 %154 }
  0xac   :  { %v160_v56 = vrot.slane %v155_v50, 2  ;;  %v182_v62 = vrot.slane %v177_v49, 2 }
  0xaf   :  { %v1831_v51 = vpop.permute.xlu1 %178  ;;  %v1833_v52 = vpop.permute.xlu0 %156 }
  0xb0   :  { %v161_v53 = vrot.slane %v1833_v52, 2  ;;  %v183_v60 = vrot.slane %v1831_v51, 2 }
  0xb2   :  { %v164_v57 = vsel %vm163_vm3, %v160_v56, %v161_v53  ;;  %v185_v3 = vsel %vm163_vm3, %v182_v62, %v183_v60  ;;  %v1895_v62 = vsub.s32 %v507_v45, %v509_v46 }
  0xb3   :  { %v1836_v54 = vpop.permute.xlu1 %199  ;;  %v198_v55 = vpop.permute.xlu0 %197  ;;  %v166_v61 = vsel %vm165_vm4, %v155_v50, %v164_v57  ;;  %v187_v11 = vsel %vm186_vm5, %v177_v49, %v185_v3 }
  0xb4   :  { %v204_v63 = vrot.slane %v1836_v54, 2  ;;  %v203_v0 = vrot.slane %v198_v55, 2  ;;  %v173_v4 = vmax.f32 %v1770_v10, %v166_v61 }
  0xb6   :  { %v206_v7 = vsel %vm163_vm3, %v203_v0, %v204_v63  ;;  %v194_v14 = vmax.f32 %v173_v4, %v187_v11  ;;  %v408_v11 = vld [vmem:[#allocation7 + $0x200] sm:$0xff] }
  0xb7   :  { %v1841_v58 = vpop.permute.xlu1 %220  ;;  %v219_v59 = vpop.permute.xlu0 %218  ;;  %v208_v18 = vsel %vm207_vm6, %v198_v55, %v206_v7 }
  0xb8   :  { %v225_v5 = vrot.slane %v1841_v58, 2  ;;  %v224_v6 = vrot.slane %v219_v59, 2  ;;  %v215_v23 = vmax.f32 %v194_v14, %v208_v18 }
  0xba   :  { %v227_v10 = vsel %vm163_vm3, %v224_v6, %v225_v5 }
  0xbb   :  { %v1846_v1 = vpop.permute.xlu1 %241  ;;  %v240_v2 = vpop.permute.xlu0 %239  ;;  %v229_v20 = vsel %vm228_vm7, %v219_v59, %v227_v10 }
  0xbc   :  { %v246_v8 = vrot.slane %v1846_v1, 2  ;;  %v245_v9 = vrot.slane %v240_v2, 2  ;;  %v236_v28 = vmax.f32 %v215_v23, %v229_v20  ;;  %v427_v20 = vld [vmem:[#allocation7 + $0x298] sm:$0xff] }
  0xbe   :  { %v248_v19 = vsel %vm163_vm3, %v245_v9, %v246_v8 }
  0xbf   :  { %v1858_v12 = vpop.permute.xlu1 %262  ;;  %v261_v13 = vpop.permute.xlu0 %260  ;;  %v250_v27 = vsel %vm249_vm8, %v240_v2, %v248_v19 }
  0xc0   :  { %v267_v15 = vrot.slane %v1858_v12, 2  ;;  %v266_v17 = vrot.slane %v261_v13, 2  ;;  %v257_v36 = vmax.f32 %v236_v28, %v250_v27  ;;  %v441_v27 = vld [vmem:[#allocation7 + $0x308] sm:$0xff] }
  0xc2   :  { %v269_v24 = vsel %vm163_vm3, %v266_v17, %v267_v15 }
  0xc3   :  { %v1869_v21 = vpop.permute.xlu1 %283  ;;  %v282_v22 = vpop.permute.xlu0 %281  ;;  %v271_v30 = vsel %vm270_vm9, %v261_v13, %v269_v24  ;;  %v409_v13 = vld [vmem:[#allocation7 + $0x208] sm:$0xff] }
  0xc4   :  { %v288_v25 = vrot.slane %v1869_v21, 2  ;;  %v287_v26 = vrot.slane %v282_v22, 2  ;;  %v278_v40 = vmax.f32 %v257_v36, %v271_v30  ;;  %v1415_v30 = vpack.c.bf16 %v409_v13, %v408_v11 }
  0xc6   :  { %v290_v29 = vsel %vm163_vm3, %v287_v26, %v288_v25  ;;  %v440_v26 = vld [vmem:[#allocation7 + $0x300] sm:$0xff] }
  0xc7   :  { %v1880_v31 = vpop.permute.xlu1 %304  ;;  %v303_v32 = vpop.permute.xlu0 %302  ;;  %v292_v39 = vsel %vm291_vm10, %v282_v22, %v290_v29 }
  0xc8   :  { %v309_v37 = vrot.slane %v1880_v31, 2  ;;  %v308_v38 = vrot.slane %v303_v32, 2  ;;  %v299_v47 = vmax.f32 %v278_v40, %v292_v39 }
  0xca   :  { %v311_v41 = vsel %vm163_vm3, %v308_v38, %v309_v37 }
  0xcb   :  { %v313_v42 = vsel %vm312_vm11, %v303_v32, %v311_v41  ;;  %v1888_v43 = vpop.permute.xlu1 %325  ;;  %v324_v44 = vpop.permute.xlu0 %323  ;;  %v458_v41 = vld [vmem:[#allocation7 + $0x390] sm:$0xff] }
  0xcc   :  { %v330_v49 = vrot.slane %v1888_v43, 2  ;;  %v329_v50 = vrot.slane %v324_v44, 2  ;;  %v320_v55 = vmax.f32 %v299_v47, %v313_v42  ;;  %v459_v42 = vld [vmem:[#allocation7 + $0x398] sm:$0xff] }
  0xce   :  { %v332_v56 = vsel %vm163_vm3, %v329_v50, %v330_v49  ;;  %v428_v50 = vld [vmem:[#allocation7 + $0x2a0] sm:$0xff] }
  0xcf   :  { %v334_v57 = vsel %vm333_vm12, %v324_v44, %v332_v56  ;;  %v181_v59 = vpop.permute.xlu1 %180  ;;  %v159_v61 = vpop.permute.xlu0 %158  ;;  %v1924_v44 = vld [vmem:[#allocation7 + $0x310] sm:$0xff] }
  0xd0   :  { %v341_v0 = vmax.f32 %v320_v55, %v334_v57  ;;  %v184_v2 = vrot.slane %v181_v59, 2  ;;  %v162_v3 = vrot.slane %v159_v61, 2  ;;  %v429_v55 = vld [vmem:[#allocation7 + $0x2a8] sm:$0xff] }
  0xd2   :  { %v188_v4 = vsel %vm163_vm3, %v183_v60, %v184_v2  ;;  %v190_v6 = vsel %vm186_vm5, %v181_v59, %v184_v2  ;;  %v167_v7 = vsel %vm163_vm3, %v161_v53, %v162_v3  ;;  %v169_v9 = vsel %vm165_vm4, %v159_v61, %v162_v3  ;;  %v426_v60 = vld [vmem:[#allocation7 + $0x290] sm:$0xff]  ;;  %v412_v3 = vld [vmem:[#allocation7 + $0x220] sm:$0xff] }
  0xd3   :  { %v168_v14 = vsel %vm165_vm4, %v1833_v52, %v167_v7  ;;  %v175_v10 = vmax.f32 %v1813_v48, %v169_v9  ;;  %v223_v17 = vpop.permute.xlu1 %222  ;;  %v202_v18 = vpop.permute.xlu0 %201  ;;  %v511_v19 = vrot.slane %v341_v0, %v1895_v62  ;;  %v504_v53 = vcombine.high %v341_v0, %v341_v0 }
  0xd4   :  { %v174_v22 = vmax.f32 %v1772_v16, %v168_v14  ;;  %v226_v23 = vrot.slane %v223_v17, 2  ;;  %v205_v24 = vrot.slane %v202_v18, 2  ;;  %v189_v28 = vsel %vm186_vm5, %v1831_v51, %v188_v4  ;;  %v413_v4 = vld [vmem:[#allocation7 + $0x228] sm:$0xff] }
  0xd5   :  { %v196_v29 = vmax.f32 %v175_v10, %v190_v6  ;;  %v519_v52 = vcombine.high %v511_v19, %v511_v19  ;;  %v1417_v33 = vpack.c.bf16 %v427_v20, %v426_v60  ;;  %v518_v40 = vrot.slane %v504_v53, %v1895_v62  ;;  %v460_v6 = vld [vmem:[#allocation7 + $0x3a0] sm:$0xff]  ;;  %v461_v10 = vld [vmem:[#allocation7 + $0x3a8] sm:$0xff] }
  0xd6   :  { %v230_v48 = vsel %vm163_vm3, %v225_v5, %v226_v23  ;;  %v195_v32 = vmax.f32 %v174_v22, %v189_v28  ;;  %v209_v16 = vsel %vm163_vm3, %v204_v63, %v205_v24  ;;  %v211_v51 = vsel %vm207_vm6, %v202_v18, %v205_v24  ;;  %v431_v18 = vld [vmem:[#allocation7 + $0x2b8] sm:$0xff]  ;;  %v444_v22 = vld [vmem:[#allocation7 + $0x320] sm:$0xff]  ;;  %v445_v53 = vld [vmem:[#allocation7 + $0x328] sm:$0xff] }
  0xd7   :  { %v210_v36 = vsel %vm207_vm6, %v1836_v54, %v209_v16  ;;  %626 = vmatprep.mubr.f32.mxu0 %v519_v52  ;;  %v1921_v38 = vpop.permute.xlu1 %264  ;;  %v244_v39 = vpop.permute.xlu0 %243  ;;  %v1447_v5 = vpack.c.bf16 %v441_v27, %v440_v26  ;;  %v217_v45 = vmax.f32 %v196_v29, %v211_v51  ;;  %v443_v54 = vld [vmem:[#allocation7 + $0x318] sm:$0xff]  ;;  %v231_v56 = vsel %vm228_vm7, %v1841_v58, %v230_v48  ;;  %v414_v26 = vld [vmem:[#allocation7 + $0x230] sm:$0xff] }
  0xd8   :  { %v216_v63 = vmax.f32 %v195_v32, %v210_v36  ;;  %v268_v46 = vrot.slane %v1921_v38, 2  ;;  %627 = vmatmul.mubr.f32.vlgmr.msra.gmra.mrb[0].mxu0 %v511_v19  ;;  %v247_v47 = vrot.slane %v244_v39, 2  ;;  %v232_v57 = vsel %vm228_vm7, %v223_v17, %v226_v23  ;;  %v430_v17 = vld [vmem:[#allocation7 + $0x2b0] sm:$0xff]  ;;  %v415_v27 = vld [vmem:[#allocation7 + $0x238] sm:$0xff] }
  0xd9   :  { %1416 = vmatpush3.bf16.msra.mxu0 %v1415_v30  ;;  %v520_v59 = vcombine.high %v518_v40, %v518_v40  ;;  %v1419_v61 = vpack.c.bf16 %v411_v35, %v410_v34  ;;  %v1449_v2 = vpack.c.bf16 %v459_v42, %v458_v41  ;;  %v1451_v13 = vpack.c.bf16 %v443_v54, %v1924_v44  ;;  %v462_v30 = vld [vmem:[#allocation7 + $0x3b0] sm:$0xff]  ;;  %v463_v48 = vld [vmem:[#allocation7 + $0x3b8] sm:$0xff]  ;;  %v432_v34 = vld [vmem:[#allocation7 + $0x2c0] sm:$0xff] }
  0xda   :  { %v237_v0 = vmax.f32 %v216_v63, %v231_v56  ;;  %1418 = vmatprep.subr.bf16.mxu0 %v1417_v33  ;;  %v272_v7 = vsel %vm163_vm3, %v267_v15, %v268_v46  ;;  %v251_v9 = vsel %vm163_vm3, %v246_v8, %v247_v47  ;;  %v1421_v14 = vpack.c.bf16 %v429_v55, %v428_v50  ;;  %v446_v41 = vld [vmem:[#allocation7 + $0x330] sm:$0xff]  ;;  %v447_v42 = vld [vmem:[#allocation7 + $0x338] sm:$0xff]  ;;  %v465_v54 = vld [vmem:[#allocation7 + $0x3c8] sm:$0xff] }
  0xdb   :  { %696 = vmatprep.mubr.f32.mxu1 %v520_v59  ;;  %v1936_v58 = vpop.permute.xlu1 %306  ;;  %v286_v11 = vpop.permute.xlu0 %285  ;;  %v238_v19 = vmax.f32 %v217_v45, %v232_v57  ;;  %v252_v60 = vsel %vm249_vm8, %v1846_v1, %v251_v9  ;;  %v253_v8 = vsel %vm249_vm8, %v244_v39, %v247_v47  ;;  %v1423_v24 = vpack.c.bf16 %v413_v4, %v412_v3  ;;  %v416_v45 = vld [vmem:[#allocation7 + $0x240] sm:$0xff]  ;;  %v434_v50 = vld [vmem:[#allocation7 + $0x2d0] sm:$0xff]  ;;  %v435_v55 = vld [vmem:[#allocation7 + $0x2d8] sm:$0xff] }
  0xdc   :  { %697 = vmatmul.mubr.f32.vlgmr.msra.gmra.mrb[0].mxu1 %v518_v40  ;;  %v310_v15 = vrot.slane %v1936_v58, 2  ;;  %v289_v20 = vrot.slane %v286_v11, 2  ;;  %v258_v23 = vmax.f32 %v237_v0, %v252_v60  ;;  %v273_v28 = vsel %vm270_vm9, %v1858_v12, %v272_v7  ;;  %v448_v59 = vld [vmem:[#allocation7 + $0x340] sm:$0xff]  ;;  %v449_v0 = vld [vmem:[#allocation7 + $0x348] sm:$0xff]  ;;  %v418_v3 = vld [vmem:[#allocation7 + $0x250] sm:$0xff] }
  0xdd   :  { %1448 = vmatpush3.bf16.msra.mxu1 %v1447_v5  ;;  %1420 = vmatpush3.bf16.msra.mxu0 %v1419_v61  ;;  %v1453_v29 = vpack.c.bf16 %v461_v10, %v460_v6  ;;  %v1425_v52 = vpack.c.bf16 %v431_v18, %v430_v17  ;;  %v259_v35 = vmax.f32 %v238_v19, %v253_v8  ;;  %v419_v4 = vld [vmem:[#allocation7 + $0x258] sm:$0xff]  ;;  %v466_v9 = vld [vmem:[#allocation7 + $0x3d0] sm:$0xff]  ;;  %v436_v18 = vld [vmem:[#allocation7 + $0x2e0] sm:$0xff] }
  0xde   :  { %v293_v1 = vsel %vm163_vm3, %v288_v25, %v289_v20  ;;  %1450 = vmatprep.subr.bf16.mxu1 %v1449_v2  ;;  %v314_v32 = vsel %vm163_vm3, %v309_v37, %v310_v15  ;;  %v279_v16 = vmax.f32 %v258_v23, %v273_v28  ;;  %1422 = vmatprep.subr.bf16.mxu0 %v1421_v14  ;;  %v433_v25 = vld [vmem:[#allocation7 + $0x2c8] sm:$0xff]  ;;  %v450_v8 = vld [vmem:[#allocation7 + $0x350] sm:$0xff]  ;;  %v451_v23 = vld [vmem:[#allocation7 + $0x358] sm:$0xff] }
  0xdf   :  { %v294_v33 = vsel %vm291_vm10, %v1869_v21, %v293_v1  ;;  %v1955_v12 = vpop.permute.xlu0 %327  ;;  %v1455_v51 = vpack.c.bf16 %v445_v53, %v444_v22  ;;  %v1427_v39 = vpack.c.bf16 %v415_v27, %v414_v26  ;;  %v274_v40 = vsel %vm270_vm9, %v1921_v38, %v268_v46  ;;  %v417_v38 = vld [vmem:[#allocation7 + $0x248] sm:$0xff]  ;;  %v464_v46 = vld [vmem:[#allocation7 + $0x3c0] sm:$0xff]  ;;  %v438_v1 = vld [vmem:[#allocation7 + $0x2f0] sm:$0xff] }
  0xe0   :  { %v331_v36 = vrot.slane %v1955_v12, 2  ;;  %v300_v5 = vmax.f32 %v279_v16, %v294_v33  ;;  %v1457_v37 = vpack.c.bf16 %v463_v48, %v462_v30  ;;  %v315_v21 = vsel %vm312_vm11, %v1880_v31, %v314_v32  ;;  %v437_v19 = vld [vmem:[#allocation7 + $0x2e8] sm:$0xff]  ;;  %v420_v53 = vld [vmem:[#allocation7 + $0x260] sm:$0xff] }
  0xe1   :  { %1452 = vmatpush3.bf16.msra.mxu1 %v1451_v13  ;;  %1424 = vmatpush3.bf16.msra.mxu0 %v1423_v24  ;;  %v1429_v63 = vpack.c.bf16 %v433_v25, %v432_v34  ;;  %v280_v31 = vmax.f32 %v259_v35, %v274_v40  ;;  %v1459_v57 = vpack.c.bf16 %v447_v42, %v446_v41  ;;  %v467_v13 = vld [vmem:[#allocation7 + $0x3d8] sm:$0xff]  ;;  %v421_v26 = vld [vmem:[#allocation7 + $0x268] sm:$0xff]  ;;  %v468_v27 = vld [vmem:[#allocation7 + $0x3e0] sm:$0xff] }
  0xe2   :  { %v335_v44 = vsel %vm163_vm3, %v330_v49, %v331_v36  ;;  %1454 = vmatprep.subr.bf16.mxu1 %v1453_v29  ;;  %1426 = vmatprep.subr.bf16.mxu0 %v1425_v52  ;;  %v321_v56 = vmax.f32 %v300_v5, %v315_v21  ;;  %v295_v61 = vsel %vm291_vm10, %v286_v11, %v289_v20  ;;  %v469_v28 = vld [vmem:[#allocation7 + $0x3e8] sm:$0xff]  ;;  %v439_v29 = vld [vmem:[#allocation7 + $0x2f8] sm:$0xff]  ;;  %v452_v16 = vld [vmem:[#allocation7 + $0x360] sm:$0xff]  ;;  %vm1092_vm3 = vcmask 9216  }
  0xe3   :  { %v336_v47 = vsel %vm333_vm12, %v1888_v43, %v335_v44  ;;  %v1431_v49 = vpack.c.bf16 %v417_v38, %v416_v45  ;;  %v1461_v6 = vpack.c.bf16 %v465_v54, %v464_v46  ;;  %v1433_v43 = vpack.c.bf16 %v435_v55, %v434_v50  ;;  %v453_v34 = vld [vmem:[#allocation7 + $0x368] sm:$0xff]  ;;  %v422_v35 = vld [vmem:[#allocation7 + $0x270] sm:$0xff]  ;;  %v471_v40 = vld [vmem:[#allocation7 + $0x3f8] sm:$0xff] }
  0xe4   :  { %v342_v2 = vmax.f32 %v321_v56, %v336_v47  ;;  %v301_v10 = vmax.f32 %v280_v31, %v295_v61  ;;  %v1463_v17 = vpack.c.bf16 %v449_v0, %v448_v59  ;;  %v1435_v11 = vpack.c.bf16 %v419_v4, %v418_v3  ;;  %v455_v42 = vld [vmem:[#allocation7 + $0x378] sm:$0xff]  ;;  %v472_v21 = vld [vmem:[#allocation7 + $0x400] sm:$0xff]  ;;  %v473_v44 = vld [vmem:[#allocation7 + $0x408] sm:$0xff] }
  0xe5   :  { %1456 = vmatpush3.bf16.msra.mxu1 %v1455_v51  ;;  %1428 = vmatpush3.bf16.msra.mxu0 %v1427_v39  ;;  %v316_v60 = vsel %vm312_vm11, %v1936_v58, %v310_v15  ;;  %v1465_v24 = vpack.c.bf16 %v467_v13, %v466_v9  ;;  %v1437_v15 = vpack.c.bf16 %v437_v19, %v436_v18  ;;  %v423_v51 = vld [vmem:[#allocation7 + $0x278] sm:$0xff]  ;;  %v470_v39 = vld [vmem:[#allocation7 + $0x3f0] sm:$0xff]  ;;  %v1636_v46 = vmov 0.0|0.0   ;;  %v476_v55 = vld [vmem:[#allocation7 + $0x420] sm:$0xff] }
  0xe6   :  { %1458 = vmatprep.subr.bf16.mxu1 %v1457_v37  ;;  %1430 = vmatprep.subr.bf16.mxu0 %v1429_v63  ;;  %v1971_v7 = vrot.slane %v342_v2, %v1895_v62  ;;  %v521_v14 = vcombine.high %v342_v2, %v342_v2  ;;  %v322_v52 = vmax.f32 %v301_v10, %v316_v60  ;;  %v474_v47 = vld [vmem:[#allocation7 + $0x410] sm:$0xff]  ;;  %v475_v54 = vld [vmem:[#allocation7 + $0x418] sm:$0xff]  ;;  %v477_v56 = vld [vmem:[#allocation7 + $0x428] sm:$0xff] }
  0xe7   :  { %v337_v30 = vsel %vm333_vm12, %v1955_v12, %v331_v36  ;;  %v1467_v48 = vpack.c.bf16 %v451_v23, %v450_v8  ;;  %v1439_v32 = vpack.c.bf16 %v421_v26, %v420_v53  ;;  %v1469_v33 = vpack.c.bf16 %v469_v28, %v468_v27  ;;  %v454_v36 = vld [vmem:[#allocation7 + $0x370] sm:$0xff]  ;;  %v479_v59 = vld [vmem:[#allocation7 + $0x438] sm:$0xff]  ;;  %v481_v0 = vld [vmem:[#allocation7 + $0x448] sm:$0xff] }
  0xe8   :  { %v536_v20 = vcombine.high %v1971_v7, %v1971_v7  ;;  %v1980_v22 = vrot.slane %v521_v14, %v1895_v62  ;;  %v1441_v25 = vpack.c.bf16 %v439_v29, %v438_v1  ;;  %v343_v5 = vmax.f32 %v322_v52, %v337_v30  ;;  %v482_v3 = vld [vmem:[#allocation7 + $0x450] sm:$0xff]  ;;  %v483_v4 = vld [vmem:[#allocation7 + $0x458] sm:$0xff]  ;;  %v493_v8 = vld [vmem:[#allocation7 + $0x4a8] sm:$0x7] }
  0xe9   :  { %1460 = vmatpush3.bf16.msra.mxu1 %v1459_v57  ;;  %1432 = vmatpush3.bf16.msra.mxu0 %v1431_v49  ;;  %v1471_v37 = vpack.c.bf16 %v453_v34, %v452_v16  ;;  %v1443_v12 = vpack.c.bf16 %v423_v51, %v422_v35  ;;  %v1473_v41 = vpack.c.bf16 %v471_v40, %v470_v39  ;;  %v478_v57 = vld [vmem:[#allocation7 + $0x430] sm:$0xff]  ;;  %v480_v49 = vld [vmem:[#allocation7 + $0x440] sm:$0xff]  ;;  %v487_v14 = vld [vmem:[#allocation7 + $0x478] sm:$0xff] }
  0xea   :  { %1462 = vmatprep.subr.bf16.mxu1 %v1461_v6  ;;  %1434 = vmatprep.subr.bf16.mxu0 %v1433_v43  ;;  %v537_v58 = vcombine.high %v1980_v22, %v1980_v22  ;;  %v1989_v63 = vrot.slane %v343_v5, %v1895_v62  ;;  %v1475_v45 = vpack.c.bf16 %v455_v42, %v454_v36  ;;  %v484_v43 = vld [vmem:[#allocation7 + $0x460] sm:$0xff]  ;;  %v486_v13 = vld [vmem:[#allocation7 + $0x470] sm:$0xff]  ;;  %v491_v60 = vld [vmem:[#allocation7 + $0x498] sm:$0xff]  ;;  %v1639_v36 = vmov 0.0  }
  0xeb   :  { %766 = vmatprep.mubr.f32.mxu0 %v536_v20  ;;  %v1478_v38 = vpack.c.bf16 %v473_v44, %v472_v21  ;;  %v1481_v62 = vpack.c.bf16 %v475_v54, %v474_v47  ;;  %v1484_v31 = vpack.c.bf16 %v477_v56, %v476_v55  ;;  %v1487_v61 = vpack.c.bf16 %v479_v59, %v478_v57  ;;  %v490_v19 = vld [vmem:[#allocation7 + $0x490] sm:$0xff]  ;;  %v915_v26 = vld [vmem:[%s2104_s4 + $0x10] sm:$0xff]  ;;  %v920_v30 = vld [vmem:[%s2104_s4 + $0x38] sm:$0xff] }
  0xec   :  { %836 = vmatprep.mubr.f32.mxu1 %v537_v58  ;;  %v545_v50 = vcombine.high %v1989_v63, %v1989_v63  ;;  %v1490_v2 = vpack.c.bf16 %v481_v0, %v480_v49  ;;  %v1493_v6 = vpack.c.bf16 %v483_v4, %v482_v3  ;;  %v1499_v10 = vpack.c.bf16 %v487_v14, %v486_v13  ;;  %v914_v53 = vld [vmem:[%s2104_s4 + $0x8] sm:$0xff]  ;;  %v916_v58 = vld [vmem:[%s2104_s4 + $0x18] sm:$0xff]  ;;  %v917_v28 = vld [vmem:[%s2104_s4 + $0x20] sm:$0xff] }
  0xed   :  { %1464 = vmatpush3.bf16.msra.mxu1 %v1463_v17  ;;  %1436 = vmatpush3.bf16.msra.mxu0 %v1435_v11  ;;  %v488_v17 = vld [vmem:[#allocation7 + $0x480] sm:$0xff]  ;;  %v489_v11 = vld [vmem:[#allocation7 + $0x488] sm:$0xff]  ;;  %v1505_v20 = vpack.c.bf16 %v491_v60, %v490_v19  ;;  %v918_v1 = vld [vmem:[%s2104_s4 + $0x28] sm:$0xff] }
  0xee   :  { %1466 = vmatprep.subr.bf16.mxu1 %v1465_v24  ;;  %1438 = vmatprep.subr.bf16.mxu0 %v1437_v15  ;;  %v1502_v18 = vpack.c.bf16 %v489_v11, %v488_v17  ;;  %v913_v24 = vld [vmem:[%s2104_s4] sm:$0xff]  ;;  %v1515_v15 = vpack.c.bf16 %v916_v58, %v915_v26  ;;  %v1518_v29 = vpack.c.bf16 %v918_v1, %v917_v28  ;;  %v919_v52 = vld [vmem:[%s2104_s4 + $0x30] sm:$0xff]  ;;  %v922_v16 = vld [vmem:[%s2104_s4 + $0x48] sm:$0xff] }
  0xef   :  { %v1512_v27 = vpack.c.bf16 %v914_v53, %v913_v24  ;;  %v923_v34 = vld [vmem:[%s2104_s4 + $0x50] sm:$0xff]  ;;  %v925_v51 = vld [vmem:[%s2104_s4 + $0x60] sm:$0xff]  ;;  %v926_v39 = vld [vmem:[%s2104_s4 + $0x68] sm:$0xff] }
  0xf0   :  { %v1530_v40 = vpack.c.bf16 %v926_v39, %v925_v51  ;;  %v927_v5 = vld [vmem:[%s2104_s4 + $0x70] sm:$0xff]  ;;  %v1135_v42 = vld [vmem:[%s2103_s3] ss:$0 sm:$0xff]  ;;  %v1008_v0 = vld [vmem:[%s2106_s6 + $0x8] sm:$0xff] }
  0xf1   :  { %1468 = vmatpush3.bf16.msra.mxu1 %v1467_v48  ;;  %1440 = vmatpush3.bf16.msra.mxu0 %v1439_v32  ;;  %v1521_v48 = vpack.c.bf16 %v920_v30, %v919_v52  ;;  %v921_v32 = vld [vmem:[%s2104_s4 + $0x40] sm:$0xff] }
  0xf2   :  { %1470 = vmatprep.subr.bf16.mxu1 %v1469_v33  ;;  %1442 = vmatprep.subr.bf16.mxu0 %v1441_v25  ;;  %v1524_v33 = vpack.c.bf16 %v922_v16, %v921_v32  ;;  %v924_v25 = vld [vmem:[%s2104_s4 + $0x58] sm:$0xff]  ;;  %v1007_v49 = vld [vmem:[%s2106_s6] sm:$0xff] }
  0xf3   :  { %v1527_v35 = vpack.c.bf16 %v924_v25, %v923_v34  ;;  %v1138_v14 = vld [vmem:[%s2105_s5] ss:$0 sm:$0xff] }
  0xf5   :  { %1472 = vmatpush3.bf16.msra.mxu1 %v1471_v37  ;;  %1444 = vmatpush3.bf16.msra.mxu0 %v1443_v12  ;;  %v928_v37 = vld [vmem:[%s2104_s4 + $0x78] sm:$0xff] }
  0xf6   :  { %1474 = vmatprep.subr.bf16.mxu1 %v1473_v41  ;;  %1477 = vmatprep.subr.bf16.mxu0 %v1636_v46  ;;  %v1533_v12 = vpack.c.bf16 %v928_v37, %v927_v5 }
  0xf8   :  { %767 = vmatmul.mubr.f32.vlgmr.msra.gmra.mrb[2].mxu0 %v1971_v7  ;;  %v485_v7 = vld [vmem:[#allocation7 + $0x468] sm:$0xff] }
  0xf9   :  { %1476 = vmatpush3.bf16.msra.mxu1 %v1475_v45  ;;  %1479 = vmatpush1.bf16.msra.mxu0 %v1478_v38  ;;  %v1496_v9 = vpack.c.bf16 %v485_v7, %v484_v43  ;;  %v1009_v7 = vld [vmem:[%s2106_s6 + $0x10] sm:$0xff] }
  0xfa   :  { %1137 = vmatprep.mubr.msk.f32.mxu0 %vm555_vm13, %v545_v50  ;;  %1480 = vmatprep.subr.bf16.mxu0 %v1636_v46 }
  0xfb   :  { %1511 = vmatprep.subr.bf16.mxu1 %v1636_v46 }
  0xfc   :  { %837 = vmatmul.mubr.f32.vlgmr.msra.gmra.mrb[2].mxu1 %v1980_v22  ;;  %v492_v22 = vld [vmem:[#allocation7 + $0x4a0] sm:$0xff] }
  0xfd   :  { %1482 = vmatpush1.bf16.msra.mxu0 %v1481_v62  ;;  %v1508_v23 = vpack.c.bf16 %v493_v8, %v492_v22  ;;  %1513 = vmatpush3.bf16.msra.mxu1 %v1512_v27 }
  0xfe   :  { %1483 = vmatprep.subr.bf16.mxu0 %v1636_v46  ;;  %1514 = vmatprep.subr.bf16.mxu1 %v1636_v46 }
  0xff   :  { %1335 = vmatprep.mubr.msk.f32.mxu1 %vm1638_vm1, %v1639_v36 }
 0x101   :  { %1485 = vmatpush1.bf16.msra.mxu0 %v1484_v31  ;;  %1516 = vmatpush3.bf16.msra.mxu1 %v1515_v15 }
 0x102   :  { %1486 = vmatprep.subr.bf16.mxu0 %v1636_v46  ;;  %1517 = vmatprep.subr.bf16.mxu1 %v1636_v46 }
 0x105   :  { %1488 = vmatpush1.bf16.msra.mxu0 %v1487_v61  ;;  %1519 = vmatpush3.bf16.msra.mxu1 %v1518_v29 }
 0x106   :  { %1489 = vmatprep.subr.bf16.mxu0 %v1636_v46  ;;  %1520 = vmatprep.subr.bf16.mxu1 %v1636_v46 }
 0x109   :  { %1491 = vmatpush1.bf16.msra.mxu0 %v1490_v2  ;;  %1522 = vmatpush3.bf16.msra.mxu1 %v1521_v48 }
 0x10a   :  { %1492 = vmatprep.subr.bf16.mxu0 %v1636_v46  ;;  %1523 = vmatprep.subr.bf16.mxu1 %v1636_v46 }
 0x10d   :  { %1494 = vmatpush1.bf16.msra.mxu0 %v1493_v6  ;;  %1525 = vmatpush3.bf16.msra.mxu1 %v1524_v33  ;;  %v1536_v6 = vpack.c.bf16 %v1008_v0, %v1007_v49 }
 0x10e   :  { %1495 = vmatprep.subr.bf16.mxu0 %v1636_v46  ;;  %1526 = vmatprep.subr.bf16.mxu1 %v1636_v46 }
 0x111   :  { %1497 = vmatpush1.bf16.msra.mxu0 %v1496_v9  ;;  %1528 = vmatpush3.bf16.msra.mxu1 %v1527_v35  ;;  %v1010_v9 = vld [vmem:[%s2106_s6 + $0x18] sm:$0xff]  ;;  %s1594_s6 = scalar_lea.vmem %s1101_s29, 32 }
 0x112   :  { %1498 = vmatprep.subr.bf16.mxu0 %v1636_v46  ;;  %1529 = vmatprep.subr.bf16.mxu1 %v1636_v46  ;;  %v1539_v13 = vpack.c.bf16 %v1010_v9, %v1009_v7  ;;  %p1595_p13 = scmp.ne.s32.totalorder %s1101_s29, %s1594_s6  ;;  %p1600_p1 = scmp.lt.s32.totalorder %s1594_s6, %s1594_s6 }
 0x114   :  { %p1601_p2 = por %p1600_p1, %p1599_p0 }
 0x115   :  { %1500 = vmatpush1.bf16.msra.mxu0 %v1499_v10  ;;  %1531 = vmatpush3.bf16.msra.mxu1 %v1530_v40 }
 0x116   :  { %1501 = vmatprep.subr.bf16.mxu0 %v1636_v46  ;;  %1532 = vmatprep.subr.bf16.mxu1 %v1636_v46  ;;  %p1602_p3 = pnand %p1601_p2, %p1595_p13 }
 0x119   :  { %1503 = vmatpush1.bf16.msra.mxu0 %v1502_v18  ;;  %1534 = vmatpush3.bf16.msra.mxu1 %v1533_v12 }
 0x11a   :  { %1504 = vmatprep.subr.bf16.mxu0 %v1636_v46  ;;  %1535 = vmatprep.subr.bf16.mxu1 %v1636_v46 }
 0x11d   :  { %1506 = vmatpush1.bf16.msra.mxu0 %v1505_v20 }
 0x11e   :  { %1507 = vmatprep.subr.bf16.mxu0 %v1636_v46 }
 0x121   :  { %1510 = vmatpush1.bf16.msk.msra.mxu0 %vm1509_vm0, %v1508_v23 }
 0x124   :  { %907 = vmatmul.mubr.f32.vlgmr.msra.gmra.mrb[4].mxu0 %v1989_v63 }
 0x1ab   :  { %v1173_v41 = vpop.f32.mrb[0].mxu0 }
 0x1ac   :  { %v1174_v21 = vpop.f32.mrb[1].mxu0 }
 0x1ad   :  { %v1175_v44 = vadd.f32 %v1174_v21, %v1173_v41 }
 0x1af   :  { %v629_v63 = vadd.f32 %v1175_v44, %v1135_v42  ;;  %v1208_v45 = vpop.f32.mrb[0].mxu1 }
 0x1b0   :  { %v1209_v38 = vpop.f32.mrb[1].mxu1 }
 0x1b1   :  { %v1210_v47 = vadd.f32 %v1209_v38, %v1208_v45 }
 0x1b3   :  { %v699_v54 = vadd.f32 %v1210_v47, %v629_v63 }
 0x1cb   :  { %v1243_v50 = vpop.f32.mrb[2].mxu0 }
 0x1cc   :  { %v1244_v62 = vpop.f32.mrb[3].mxu0 }
 0x1cd   :  { %v1245_v55 = vadd.f32 %v1244_v62, %v1243_v50 }
 0x1cf   :  { %v769_v56 = vadd.f32 %v1245_v55, %v699_v54  ;;  %v1278_v31 = vpop.f32.mrb[2].mxu1 }
 0x1d0   :  { %v1279_v57 = vpop.f32.mrb[3].mxu1 }
 0x1d1   :  { %v1280_v59 = vadd.f32 %v1279_v57, %v1278_v31 }
 0x1d3   :  { %v839_v61 = vadd.f32 %v1280_v59, %v769_v56 }
 0x1f7   :  { %v908_v2 = vpop.f32.mrb[4].mxu0 }
 0x1f8   :  { %v909_v3 = vadd.f32 %v908_v2, %v839_v61  ;;  %v910_v4 = vpop.f32.mrb[5].mxu0 }
 0x1fa   :  { %v912_v43 = vmax.f32 %v909_v3, 0.0 }
 0x1fc   :  { %1336 = vmatmul.mubr.f32.vlgmr.msra.gmra.mrb[4].mxu1 %v912_v43 }
 0x1fd   :  { %1537 = vmatpush3.bf16.msra.mxu1 %v1536_v6  ;;  %1346 = vmatprep.mubr.msk.f32.mxu1 %vm1638_vm1, %v1639_v36 }
 0x1fe   :  { %1538 = vmatprep.subr.bf16.mxu1 %v1636_v46  ;;  %v1139_v46 = vld [vmem:[%s2107_s7] ss:$0 sm:$0xff] }
 0x201   :  { %1540 = vmatpush3.bf16.msra.mxu1 %v1539_v13 }
 0x2cf   :  { %v1002_v10 = vpop.f32.mrb[4].mxu1 }
 0x2d0   :  { %v1003_v17 = vadd.f32 %v1138_v14, %v1002_v10  ;;  %v1337_v11 = vpop.f32.mrb[5].mxu1 }
 0x2d2   :  { %v1006_v18 = vmax.f32 %v1003_v17, 0.0 }
 0x2d4   :  { %1347 = vmatmul.mubr.msk.f32.vlgmr.msra.gmra.mrb[6].mxu1 %vm1018_vm2, %v1006_v18 }
 0x3a7   :  { %v1088_v19 = vpop.f32.mrb[6].mxu1 }
 0x3a8   :  { %v1089_v60 = vadd.f32 %v1139_v46, %v1088_v19  ;;  %v1348_v20 = vpop.f32.mrb[7].mxu1 }
 0x3aa   :  { %1093 = vst.msk [vmem:[#allocation8] sm:$0x3] %vm1092_vm3, %v1089_v60 }
 0x3ab   :  { %1605 = shalt.err (!%p1602_p3)
}
 0x3ac   :  { %s1606_s10 = scalar_lea.hbm %s2108_s8, 32 }
 0x3ad   :  { %p1607_p4 = scmp.ne.s32.totalorder %s2108_s8, %s1606_s10  ;;  %p1610_p5 = scmp.lt.u32.totalorder %s1606_s10, %s2108_s8 }
 0x3af   :  { %p1612_p6 = pnand %p1610_p5, %p1607_p4 }
 0x3b1   :  { %1615 = shalt.err (!%p1612_p6)
}
 0x3b2   :  { %1103 = dma.vmem_to_hbm [thread:$0]  %s1101_s29, 32, %s2108_s8, [#allocation5]  }
 0x3b3   :  { %1620 = dma.done.wait [#allocation5], 32  }
 0x3b4   :  { %1621 = vsyncadd [#allocation5], 4294967264 }
 0x3b5   :  { %1107 = vsyncpa [#allocation4], 1 }
 0x3b6   :  { %1108 = vsyncpa [#allocation5], 1 }
 0x3b7   :  { %1109 = vsyncpa [#allocation6], 1 }

</bundles_post_ra>
